<compile_context>
chip_gen: v7x
topology: tpu7x:2x2x1
jax: 0.10.0
libtpu: 0.0.40
codegen_flags: <defaults>
</compile_context>

<pallas_src>
import jax
import jax.numpy as jnp
from jax.experimental import pallas as pl
from jax.experimental.pallas import tpu as pltpu

LANES = 128           # lane width
MAX_TILE_ROWS = 2048  # up to 1 MiB f32 per block
EPS = 1e-12


def _xtanh_mean_kernel(y_ref, yp_ref, out_ref, acc_ref):
    """Per-split partial sum of ey*tanh(ey) into an (8,128) accumulator."""
    i = pl.program_id(1)                       # reduction step ('arbitrary')

    @pl.when(i == 0)
    def _():
        acc_ref[...] = jnp.zeros_like(acc_ref)

    ey = y_ref[...].astype(jnp.float32) - yp_ref[...].astype(jnp.float32) + EPS
    val = ey * jnp.tanh(ey)
    acc_ref[...] += val.reshape(-1, 8, LANES).sum(axis=0)

    @pl.when(i == pl.num_programs(1) - 1)
    def _():
        out_ref[...] = acc_ref[...][None]      # (1, 8, LANES) partial sum


def _xtanh_elem_kernel(y_ref, yp_ref, out_ref):
    ey = y_ref[...].astype(jnp.float32) - yp_ref[...].astype(jnp.float32) + EPS
    out_ref[...] = (ey * jnp.tanh(ey)).astype(out_ref.dtype)


def _xtanh_vals(a, b):
    """Plain-jnp reference expression, used for the (small) ragged tail."""
    ey = a.astype(jnp.float32) - b.astype(jnp.float32) + EPS
    return ey * jnp.tanh(ey)


def _rows_view(flat):
    """(n,) -> (ceil(n/128), 128).  Free reshape when n % 128 == 0; otherwise a
    single <128-element pad (the padded row is never read by the kernel)."""
    n_pad = (-flat.shape[0]) % LANES
    if n_pad:
        flat = jnp.pad(flat, (0, n_pad))
    return flat.reshape(-1, LANES)


def _mean_splits():
    """2-way 'parallel' split only where two TensorCores share the grid."""
    try:
        kind = jax.devices()[0].device_kind.lower()
    except Exception:
        return 1
    return 2 if any(tag in kind for tag in ("v4", "v5p", "v7")) else 1


def xtanh_loss(y_t, y_prime_t, reduction="mean"):
    """Pallas implementation of XTanhLoss.forward."""
    assert y_t.shape == y_prime_t.shape
    out_dtype = jnp.promote_types(y_t.dtype, y_prime_t.dtype)
    orig_shape = y_t.shape
    n = y_t.size

    y_flat = y_t.reshape(-1)
    yp_flat = y_prime_t.reshape(-1)
    rows_valid = n // LANES                    # fully valid 128-lane rows

    if reduction == "mean":
        num_splits = _mean_splits()
        if rows_valid < 8 * num_splits:
            num_splits = 1
        tile_rows = min(MAX_TILE_ROWS, (rows_valid // (8 * num_splits)) * 8)

        if tile_rows == 0:
            # < 1024 valid elements: a kernel launch costs more than it saves.
            return (jnp.sum(_xtanh_vals(y_flat, yp_flat)) / n).astype(out_dtype)

        steps = rows_valid // (num_splits * tile_rows)
        prefix_rows = num_splits * steps * tile_rows
        prefix_elems = prefix_rows * LANES

        y2d = _rows_view(y_flat)
        yp2d = _rows_view(yp_flat)

        in_map = lambda s, i: (s * steps + i, 0)
        partials = pl.pallas_call(
            _xtanh_mean_kernel,
            out_shape=jax.ShapeDtypeStruct((num_splits, 8, LANES), jnp.float32),
            grid_spec=pltpu.PrefetchScalarGridSpec(
                num_scalar_prefetch=0,
                grid=(num_splits, steps),
                in_specs=[
                    pl.BlockSpec((tile_rows, LANES), in_map),
                    pl.BlockSpec((tile_rows, LANES), in_map),
                ],
                out_specs=pl.BlockSpec((1, 8, LANES), lambda s, i: (s, 0, 0)),
                scratch_shapes=[pltpu.VMEM((8, LANES), jnp.float32)],
            ),
            compiler_params=pltpu.CompilerParams(
                dimension_semantics=("parallel", "arbitrary")),
        )(y2d, yp2d)

        total = jnp.sum(partials)
        if prefix_elems < n:                   # ragged tail (< one chunk)
            total = total + jnp.sum(
                _xtanh_vals(y_flat[prefix_elems:], yp_flat[prefix_elems:]))
        return (total / n).astype(out_dtype)

    # reduction == 'none' -> elementwise, same shape as inputs
    tile_rows = min(MAX_TILE_ROWS, (rows_valid // 8) * 8)
    if tile_rows == 0:
        return _xtanh_vals(y_flat, yp_flat).astype(out_dtype).reshape(orig_shape)

    steps = rows_valid // tile_rows
    prefix_rows = steps * tile_rows
    prefix_elems = prefix_rows * LANES

    y2d = _rows_view(y_flat)
    yp2d = _rows_view(yp_flat)

    out2d = pl.pallas_call(
        _xtanh_elem_kernel,
        out_shape=jax.ShapeDtypeStruct((prefix_rows, LANES), out_dtype),
        grid_spec=pltpu.PrefetchScalarGridSpec(
            num_scalar_prefetch=0,
            grid=(steps,),
            in_specs=[
                pl.BlockSpec((tile_rows, LANES), lambda i: (i, 0)),
                pl.BlockSpec((tile_rows, LANES), lambda i: (i, 0)),
            ],
            out_specs=pl.BlockSpec((tile_rows, LANES), lambda i: (i, 0)),
        ),
        compiler_params=pltpu.CompilerParams(
            dimension_semantics=("parallel",)),
    )(y2d, yp2d)

    if prefix_elems == n:                      # aligned: free reshape, no copy
        return out2d.reshape(orig_shape)
    tail = _xtanh_vals(y_flat[prefix_elems:],
                       yp_flat[prefix_elems:]).astype(out_dtype)
    return jnp.concatenate([out2d.reshape(-1), tail]).reshape(orig_shape)


if __name__ == "__main__":
    key = jax.random.PRNGKey(0)
    k1, k2, k3, k4 = jax.random.split(key, 4)

    # Generic elementwise-loss input: (B, C, H, W).
    shape = (2, 4, 16, 16)
    y_t = jax.random.normal(k1, shape, dtype=jnp.float32)
    y_prime_t = jax.random.normal(k2, shape, dtype=jnp.float32)

    loss = xtanh_loss(y_t, y_prime_t, reduction="mean")
    jax.block_until_ready(loss)

    ey = y_t - y_prime_t + EPS
    ref = ey * jnp.tanh(ey)
    assert jnp.allclose(loss, jnp.mean(ref), rtol=1e-5, atol=1e-6), (loss, jnp.mean(ref))

    elem = xtanh_loss(y_t, y_prime_t, reduction="none")
    jax.block_until_ready(elem)
    assert jnp.allclose(elem, ref, rtol=1e-5, atol=1e-6)

    # Non-lane-aligned size: exercises the prefix-kernel + jnp-tail path.
    shape2 = (5, 17, 13)                       # 1105 elements
    a = jax.random.normal(k3, shape2, dtype=jnp.float32)
    b = jax.random.normal(k4, shape2, dtype=jnp.float32)
    loss2 = xtanh_loss(a, b, reduction="mean")
    elem2 = xtanh_loss(a, b, reduction="none")
    jax.block_until_ready((loss2, elem2))
    ey2 = a - b + EPS
    ref2 = ey2 * jnp.tanh(ey2)
    assert jnp.allclose(loss2, jnp.mean(ref2), rtol=1e-5, atol=1e-6)
    assert jnp.allclose(elem2, ref2, rtol=1e-5, atol=1e-6)

    print("KERNEL_OK")
</pallas_src>

<mosaic_0001>
module attributes {stable_mosaic.version = 11 : i64} {
  func.func @_xtanh_mean_kernel(%arg0: i32, %arg1: i32, %arg2: memref<16x128xf32, #tpu.memory_space<vmem>>, %arg3: memref<16x128xf32, #tpu.memory_space<vmem>>, %arg4: memref<1x8x128xf32, #tpu.memory_space<vmem>>, %arg5: memref<8x128xf32, #tpu.memory_space<vmem>>) attributes {dimension_semantics = [#tpu.dimension_semantics<parallel>, #tpu.dimension_semantics<arbitrary>], iteration_bounds = array<i64: 1, 1>, scalar_prefetch = 0 : i64, scratch_operands = 1 : i64, tpu.core_type = #tpu.core_type<tc>, window_params = [{transform_indices = @transform_0, window_bounds = array<i64: 16, 128>}, {transform_indices = @transform_1, window_bounds = array<i64: 16, 128>}, {transform_indices = @transform_2, window_bounds = array<i64: 1, 8, 128>}]} {
    %c0_i32 = arith.constant 0 : i32
    %0 = arith.cmpi eq, %arg1, %c0_i32 : i32
    %1 = arith.extui %0 : i1 to i32
    %c0_i32_0 = arith.constant 0 : i32
    %2 = arith.cmpi ne, %1, %c0_i32_0 : i32
    scf.if %2 {
      %cst_11 = arith.constant 0.000000e+00 : f32
      %18 = vector.broadcast %cst_11 : f32 to vector<8x128xf32>
      %c0_12 = arith.constant 0 : index
      %c0_13 = arith.constant 0 : index
      %19 = vector.load %arg5[%c0_12, %c0_13] : memref<8x128xf32, #tpu.memory_space<vmem>>, vector<8x128xf32>
      tpu.vector_store %arg5[%c0_12, %c0_13], %18 {strides = array<i32>} : memref<8x128xf32, #tpu.memory_space<vmem>>, vector<8x128xf32>,
    } else {
    }
    %c0 = arith.constant 0 : index
    %c0_1 = arith.constant 0 : index
    %3 = vector.load %arg2[%c0, %c0_1] : memref<16x128xf32, #tpu.memory_space<vmem>>, vector<16x128xf32>
    %c0_2 = arith.constant 0 : index
    %c0_3 = arith.constant 0 : index
    %4 = vector.load %arg3[%c0_2, %c0_3] : memref<16x128xf32, #tpu.memory_space<vmem>>, vector<16x128xf32>
    %5 = arith.subf %3, %4 : vector<16x128xf32>
    %cst = arith.constant 9.99999996E-13 : f32
    %6 = vector.broadcast %cst : f32 to vector<16x128xf32>
    %7 = arith.addf %5, %6 : vector<16x128xf32>
    %8 = math.tanh %7 : vector<16x128xf32>
    %9 = arith.mulf %7, %8 : vector<16x128xf32>
    %c0_4 = arith.constant 0 : index
    %c0_5 = arith.constant 0 : index
    %10 = vector.load %arg5[%c0_4, %c0_5] : memref<8x128xf32, #tpu.memory_space<vmem>>, vector<8x128xf32>
    %11 = vector.shape_cast %9 : vector<16x128xf32> to vector<2x8x128xf32>
    %cst_6 = arith.constant dense<0.000000e+00> : vector<8x128xf32>
    %12 = vector.multi_reduction <add>, %11, %cst_6 [0] : vector<2x8x128xf32> to vector<8x128xf32>
    %13 = arith.addf %10, %12 : vector<8x128xf32>
    %c0_7 = arith.constant 0 : index
    %c0_8 = arith.constant 0 : index
    %14 = vector.load %arg5[%c0_7, %c0_8] : memref<8x128xf32, #tpu.memory_space<vmem>>, vector<8x128xf32>
    tpu.vector_store %arg5[%c0_7, %c0_8], %13 {strides = array<i32>} : memref<8x128xf32, #tpu.memory_space<vmem>>, vector<8x128xf32>,
    %c0_i32_9 = arith.constant 0 : i32
    %15 = arith.cmpi eq, %arg1, %c0_i32_9 : i32
    %16 = arith.extui %15 : i1 to i32
    %c0_i32_10 = arith.constant 0 : i32
    %17 = arith.cmpi ne, %16, %c0_i32_10 : i32
    scf.if %17 {
      %c0_11 = arith.constant 0 : index
      %c0_12 = arith.constant 0 : index
      %18 = vector.load %arg5[%c0_11, %c0_12] : memref<8x128xf32, #tpu.memory_space<vmem>>, vector<8x128xf32>
      %19 = vector.shape_cast %18 : vector<8x128xf32> to vector<1x8x128xf32>
      %c0_13 = arith.constant 0 : index
      %c0_14 = arith.constant 0 : index
      %c0_15 = arith.constant 0 : index
      %20 = vector.load %arg4[%c0_13, %c0_14, %c0_15] : memref<1x8x128xf32, #tpu.memory_space<vmem>>, vector<1x8x128xf32>
      tpu.vector_store %arg4[%c0_13, %c0_14, %c0_15], %19 {strides = array<i32>} : memref<1x8x128xf32, #tpu.memory_space<vmem>>, vector<1x8x128xf32>,
    } else {
    }
    return
  }
  func.func @transform_0(%arg0: i32, %arg1: i32) -> (i32, i32) {
    %c1_i32 = arith.constant 1 : i32
    %0 = arith.muli %arg0, %c1_i32 : i32
    %1 = arith.addi %0, %arg1 : i32
    %c0_i32 = arith.constant 0 : i32
    %c0_i32_0 = arith.constant 0 : i32
    return %1, %c0_i32 : i32, i32
  }
  func.func @transform_1(%arg0: i32, %arg1: i32) -> (i32, i32) {
    %c1_i32 = arith.constant 1 : i32
    %0 = arith.muli %arg0, %c1_i32 : i32
    %1 = arith.addi %0, %arg1 : i32
    %c0_i32 = arith.constant 0 : i32
    %c0_i32_0 = arith.constant 0 : i32
    return %1, %c0_i32 : i32, i32
  }
  func.func @transform_2(%arg0: i32, %arg1: i32) -> (i32, i32, i32) {
    %c0_i32 = arith.constant 0 : i32
    %c0_i32_0 = arith.constant 0 : i32
    %c0_i32_1 = arith.constant 0 : i32
    return %arg0, %c0_i32, %c0_i32_0 : i32, i32, i32
  }
}

</mosaic_0001>

<bundles_post_ra>
// kernel: tpu_custom_call.1
= control target key start
LH: loop header
LB: loop body
LE: loop exit
PB: predicated region body
PF: predicated region fallthrough
CT: control target
= control target key end

     0   :  { %7 = vsyncpa [#allocation4], 0  ;;  %s231_s0 = inlined_call_operand.hbm [shape: f32[16,128], index: 0, kind: input, shape index: {}]   ;;  %s232_s1 = inlined_call_operand.hbm [shape: f32[16,128], index: 1, kind: input, shape index: {}]   ;;  %s233_s2 = inlined_call_operand.hbm [shape: f32[1,8,128], index: 2, kind: output, shape index: {}]  }
   0x1   :  { %8 = vsyncpa [#allocation7], 0 }
   0x2   :  { %9 = vsyncpa [#allocation5], 0  ;;  %s175_s9 = smov [#allocation3]   ;;  %s103_s13 = scalar_lea.hbm %s231_s0, 256 }
   0x3   :  { %s19_s10 = sshll.u32 %s175_s9, 4  ;;  %p104_p0 = scmp.ne.s32.totalorder %s231_s0, %s103_s13  ;;  %s20_s10 = int_to_ptr.vmem [resolvable:$true] %s19_s10 }
   0x4   :  { %p107_p1 = scmp.lt.u32.totalorder %s103_s13, %s231_s0 }
   0x6   :  { %p109_p2 = pnand %p107_p1, %p104_p0 }
   0x8   :  { %112 = shalt.err (!%p109_p2)
}
   0x9   :  { %s113_s18 = scalar_lea.vmem %s20_s10, 256  ;;  %p118_p4 = scmp.lt.s32.totalorder %s20_s10, %s20_s10 }
   0xa   :  { %p114_p3 = scmp.ne.s32.totalorder %s20_s10, %s113_s18  ;;  %p119_p5 = scmp.lt.s32.totalorder %s113_s18, %s113_s18 }
   0xc   :  { %p120_p6 = por %p119_p5, %p118_p4 }
   0xe   :  { %p121_p7 = pnand %p120_p6, %p114_p3 }
  0x10   :  { %124 = shalt.err (!%p121_p7)
}
  0x11   :  { %s176_s19 = smov 128   ;;  %s177_s20 = smov 8  }
  0x12   :  { %25 = dma.hbm_to_vmem [thread:$0]  %s231_s0, 256, %s20_s10, [#allocation4], %s176_s19, %s176_s19, %s177_s20  }
  0x13   :  { %s178_s23 = smov [#allocation6]   ;;  %s125_s27 = scalar_lea.hbm %s232_s1, 256 }
  0x14   :  { %s35_s24 = sshll.u32 %s178_s23, 4  ;;  %p126_p8 = scmp.ne.s32.totalorder %s232_s1, %s125_s27  ;;  %s36_s24 = int_to_ptr.vmem [resolvable:$true] %s35_s24 }
  0x15   :  { %p129_p9 = scmp.lt.u32.totalorder %s125_s27, %s232_s1 }
  0x17   :  { %p131_p10 = pnand %p129_p9, %p126_p8 }
  0x19   :  { %134 = shalt.err (!%p131_p10)
}
  0x1a   :  { %s135_s4 = scalar_lea.vmem %s36_s24, 256  ;;  %p140_p12 = scmp.lt.s32.totalorder %s36_s24, %s36_s24 }
  0x1b   :  { %p136_p11 = scmp.ne.s32.totalorder %s36_s24, %s135_s4  ;;  %p141_p13 = scmp.lt.s32.totalorder %s135_s4, %s135_s4 }
  0x1d   :  { %p142_p0 = por %p141_p13, %p140_p12 }
  0x1f   :  { %p143_p1 = pnand %p142_p0, %p136_p11 }
  0x21   :  { %146 = shalt.err (!%p143_p1)
}
  0x22   :  { %41 = dma.hbm_to_vmem [thread:$0]  %s232_s1, 256, %s36_s24, [#allocation7], %s176_s19, %s176_s19, %s177_s20  }
  0x23   :  { %169 = dma.done.wait [#allocation4], 256  }
  0x24   :  { %170 = vsyncadd [#allocation4], 4294967040 }
  0x25   :  { %171 = dma.done.wait [#allocation7], 256  }
  0x26   :  { %172 = vsyncadd [#allocation7], 4294967040  ;;  %v57_v0 = vld [vmem:[#allocation3] sm:$0xff]  ;;  %v58_v1 = vld [vmem:[#allocation3 + $0x8] sm:$0xff]  ;;  %s179_s6 = smov [#allocation8]  }
  0x27   :  { %v59_v2 = vld [vmem:[#allocation6] sm:$0xff]  ;;  %v60_v3 = vld [vmem:[#allocation6 + $0x8] sm:$0xff]  ;;  %s84_s7 = sshll.u32 %s179_s6, 4  ;;  %s85_s7 = int_to_ptr.vmem [resolvable:$true] %s84_s7 }
  0x28   :  { %v61_v4 = vsub.f32 %v57_v0, %v59_v2  ;;  %v62_v5 = vsub.f32 %v58_v1, %v60_v3  ;;  %s147_s1 = scalar_lea.vmem %s85_s7, 128  ;;  %p152_p3 = scmp.lt.s32.totalorder %s85_s7, %s85_s7 }
  0x29   :  { %p148_p2 = scmp.ne.s32.totalorder %s85_s7, %s147_s1  ;;  %p153_p4 = scmp.lt.s32.totalorder %s147_s1, %s147_s1 }
  0x2a   :  { %v63_v6 = vadd.f32 1e-12, %v61_v4  ;;  %v64_v7 = vadd.f32 1e-12, %v62_v5 }
  0x2b   :  { %p154_p5 = por %p153_p4, %p152_p3 }
  0x2c   :  { %99 = vtanh.f32 %v63_v6 }
  0x2d   :  { %101 = vtanh.f32 %v64_v7  ;;  %p155_p6 = pnand %p154_p5, %p148_p2 }
  0x36   :  { %v100_v8 = vpop.eup %99 }
  0x37   :  { %v102_v9 = vpop.eup %101  ;;  %v67_v10 = vmul.f32 %v100_v8, %v63_v6 }
  0x38   :  { %v68_v11 = vmul.f32 %v102_v9, %v64_v7 }
  0x3a   :  { %v70_v12 = vadd.f32 %v68_v11, %v67_v10 }
  0x3c   :  { %77 = vst [vmem:[#allocation8] sm:$0xff] %v70_v12 }
  0x3d   :  { %158 = shalt.err (!%p155_p6)
}
  0x3e   :  { %s159_s10 = scalar_lea.hbm %s233_s2, 128 }
  0x3f   :  { %p160_p7 = scmp.ne.s32.totalorder %s233_s2, %s159_s10  ;;  %p163_p8 = scmp.lt.u32.totalorder %s159_s10, %s233_s2 }
  0x41   :  { %p165_p9 = pnand %p163_p8, %p160_p7 }
  0x43   :  { %168 = shalt.err (!%p165_p9)
}
  0x44   :  { %87 = dma.vmem_to_hbm [thread:$0]  %s85_s7, 128, %s233_s2, [#allocation5]  }
  0x45   :  { %173 = dma.done.wait [#allocation5], 128  }
  0x46   :  { %174 = vsyncadd [#allocation5], 4294967168 }
  0x47   :  { %91 = vsyncpa [#allocation4], 1 }
  0x48   :  { %92 = vsyncpa [#allocation7], 1 }
  0x49   :  { %93 = vsyncpa [#allocation5], 1 }

</bundles_post_ra>
